<compile_context>
chip_gen: v7x
topology: tpu7x:2x2x1
jax: 0.10.0
libtpu: 0.0.40
codegen_flags: <defaults>
</compile_context>

<pallas_src>
import functools

import jax
import jax.numpy as jnp
from jax.experimental import pallas as pl
from jax.experimental.pallas import tpu as pltpu

_NEG_SLOPE = 0.01      # F.leaky_relu default negative_slope
_MASK_FILL = -1e20     # masked_fill value used by the PyTorch module


def _dsa_kernel(x_ref, mask_ref, w_ref, b_ref, out_ref, *,
                r, num_heads, head_dim, seq_len):
    """One grid step == one batch tile, ALL heads fused.

    x_ref:    (tb*T, D_in)   flattened batch tile of inputs
    mask_ref: (tb, T)        validity mask (1.0 valid / 0.0 padding)
    w_ref:    (D_in, H*D)    all head projection weights (concat column order)
    b_ref:    (1, H*D)       all head projection biases  (concat column order)
    out_ref:  (tb, H*D)      readout, already in torch.cat order
    """
    bt, _ = x_ref.shape
    tb = bt // seq_len

    # Fused projection for all heads on the MXU (native input dtype, f32 acc).
    p2 = jnp.dot(x_ref[...], w_ref[...], preferred_element_type=jnp.float32)
    p2 = p2 + b_ref[...].astype(jnp.float32)
    p2 = jnp.where(p2 >= 0, p2, _NEG_SLOPE * p2)           # leaky_relu
    # Sublane-split reshape only; free relayout when T % 8 == 0.
    p = p2.reshape(tb, seq_len, num_heads * head_dim)

    mask = mask_ref[...].astype(jnp.float32)                # (tb, T)
    softmax_mask = jnp.where(mask < 0.5, jnp.float32(_MASK_FILL), mask)

    # r-step recurrent masked attention per head (VPU/XLU/EUP; MXU idle here).
    # TODO(synk): for large T*dsa_dim route the two contractions below through
    #             the MXU via batched einsums instead of the VPU form.
    z_heads = []
    for h in range(num_heads):
        ph = p[:, :, h * head_dim:(h + 1) * head_dim]        # (tb, T, D)
        q = jnp.zeros_like(mask)                             # (tb, T)
        z = jnp.zeros((tb, head_dim), jnp.float32)
        for _ in range(r):
            q = q * softmax_mask                              # torch in-place mul
            e = jnp.exp(q - jnp.max(q, axis=-1, keepdims=True))
            denom = jnp.sum(e, axis=-1, keepdims=True)        # >= 1, never 0
            a = e * pl.reciprocal(denom, approx=True) * mask  # softmax, re-mask
            z = jnp.tanh(jnp.sum(a[:, :, None] * ph, axis=1))           # (tb, D)
            q = q + jnp.sum(ph * z[:, None, :], axis=-1)                # (tb, T)
        z_heads.append(z)

    # One store of the whole tile in final concat order (lane-contiguous).
    out_ref[...] = jnp.concatenate(z_heads, axis=-1).astype(out_ref.dtype)


def dsa_forward(x, mask, w, b, *, dsa_r=3, batch_tile=None):
    """DSA.forward as a single fused Pallas kernel.

    x:    (B, T, D_in)  input features
    mask: (B, T)        1.0 = valid token, 0.0 = padding
    w:    (H, D_in, D)  per-head projection weights (== nn.Linear.weight.T)
    b:    (H, D)        per-head projection biases
    Returns (B, H*D) float32, matching torch.cat(z_list, dim=-1).
    """
    B, T, D_in = x.shape
    H, _, D = w.shape
    N = H * D

    if batch_tile is None:
        # TODO(synk): for large B*T pick the biggest batch_tile (multiple of 8
        #             rows after flattening) that keeps x + p(f32) + temps
        #             under ~48 MiB for v7x headroom.
        batch_tile = B
    assert B % batch_tile == 0, "batch_tile must divide B"
    grid = (B // batch_tile,)

    # Wrapper-side (free HBM) layout plumbing: flatten x, pack heads in
    # torch.cat order so the kernel output needs no further permutation.
    x2 = x.reshape(B * T, D_in)
    w_all = jnp.transpose(w, (1, 0, 2)).reshape(D_in, N)    # col n = (h, d)
    b_all = b.reshape(1, N)
    mask_f = mask.astype(jnp.float32)

    kernel = functools.partial(_dsa_kernel, r=dsa_r, num_heads=H,
                               head_dim=D, seq_len=T)

    # TODO(synk): single-buffer the grid-invariant w/b blocks
    #             (pipeline_mode=pl.Buffered(1)) once buffer_count=1 is proven
    #             stable on all target generations.
    return pl.pallas_call(
        kernel,
        out_shape=jax.ShapeDtypeStruct((B, N), jnp.float32),
        grid=grid,
        in_specs=[
            pl.BlockSpec((batch_tile * T, D_in), lambda i: (i, 0)),  # x tile
            pl.BlockSpec((batch_tile, T), lambda i: (i, 0)),         # mask tile
            pl.BlockSpec((D_in, N), lambda i: (0, 0)),               # fused W
            pl.BlockSpec((1, N), lambda i: (0, 0)),                  # fused b
        ],
        out_specs=pl.BlockSpec((batch_tile, N), lambda i: (i, 0)),
        compiler_params=pltpu.CompilerParams(
            dimension_semantics=("parallel",),
            vmem_limit_bytes=32 * 1024 * 1024,
        ),
    )(x2, mask_f, w_all, b_all)


def dsa_reference(x, mask, w, b, *, dsa_r=3):
    """Pure-JAX reference mirroring the PyTorch module op-for-op."""
    x = x.astype(jnp.float32)
    mask = mask.astype(jnp.float32)
    softmax_mask = jnp.where(mask == 0.0, jnp.float32(_MASK_FILL), mask)
    zs = []
    for h in range(w.shape[0]):
        p = jnp.einsum("btd,de->bte", x, w[h].astype(jnp.float32))
        p = p + b[h].astype(jnp.float32)
        p = jnp.where(p >= 0, p, _NEG_SLOPE * p)
        q = jnp.zeros_like(mask)
        z = jnp.zeros((x.shape[0], w.shape[-1]), jnp.float32)
        for _ in range(dsa_r):
            q = q * softmax_mask
            a = jax.nn.softmax(q, axis=-1) * mask
            z = jnp.tanh(jnp.sum(a[:, :, None] * p, axis=1))
            q = q + jnp.einsum("btd,bd->bt", p, z)
        zs.append(z)
    return jnp.concatenate(zs, axis=-1)


if __name__ == "__main__":
    B, T, D_IN, D_DIM, H, R = 2, 8, 32, 16, 4, 3
    key = jax.random.PRNGKey(0)
    k_x, k_w, k_b = jax.random.split(key, 3)

    x_full = jax.random.normal(k_x, (B, T, D_IN), dtype=jnp.float32)
    w = 0.2 * jax.random.normal(k_w, (H, D_IN, D_DIM), dtype=jnp.float32)
    b_rand = 0.1 * jax.random.normal(k_b, (H, D_DIM), dtype=jnp.float32)
    b_zero = jnp.zeros((H, D_DIM), dtype=jnp.float32)

    # Tolerance covers MXU default-precision matmul + approx reciprocal.
    TOL = dict(atol=5e-2, rtol=5e-2)

    # --- Test 1: fully valid mask, non-zero bias (smooth numerics). ---
    mask_full = jnp.ones((B, T), dtype=jnp.float32)
    z1 = jax.block_until_ready(dsa_forward(x_full, mask_full, w, b_rand, dsa_r=R))
    z1_ref = dsa_reference(x_full, mask_full, w, b_rand, dsa_r=R)
    assert z1.shape == (B, H * D_DIM) and z1.dtype == jnp.float32
    assert bool(jnp.all(jnp.isfinite(z1)))
    assert bool(jnp.allclose(z1, z1_ref, **TOL)), float(jnp.max(jnp.abs(z1 - z1_ref)))

    # --- Test 2: padded sequences (masking path exercised). Padded positions
    # of x are zeroed and bias is zero so the masked-slot branch of the
    # recurrence (q multiplied by -1e20 at padded slots) is exactly
    # reproducible across kernel and reference. ---
    mask_pad = jnp.array([[1, 1, 1, 1, 1, 1, 1, 1],
                          [1, 1, 1, 1, 1, 0, 0, 0]], dtype=jnp.float32)
    x_pad = x_full * mask_pad[:, :, None]
    z2 = jax.block_until_ready(dsa_forward(x_pad, mask_pad, w, b_zero, dsa_r=R))
    z2_ref = dsa_reference(x_pad, mask_pad, w, b_zero, dsa_r=R)
    assert z2.shape == (B, H * D_DIM)
    assert bool(jnp.all(jnp.isfinite(z2)))
    assert bool(jnp.allclose(z2, z2_ref, **TOL)), float(jnp.max(jnp.abs(z2 - z2_ref)))

    print("KERNEL_OK")
</pallas_src>

<mosaic_0001>
module attributes {stable_mosaic.version = 11 : i64} {
  func.func @_dsa_kernel(%arg0: i32, %arg1: memref<16x32xf32, #tpu.memory_space<vmem>>, %arg2: memref<2x8xf32, #tpu.memory_space<vmem>>, %arg3: memref<32x64xf32, #tpu.memory_space<vmem>>, %arg4: memref<1x64xf32, #tpu.memory_space<vmem>>, %arg5: memref<2x64xf32, #tpu.memory_space<vmem>>) attributes {dimension_semantics = [#tpu.dimension_semantics<parallel>], iteration_bounds = array<i64: 1>, scalar_prefetch = 0 : i64, scratch_operands = 0 : i64, tpu.core_type = #tpu.core_type<tc>, window_params = [{transform_indices = @transform_0, window_bounds = array<i64: 16, 32>}, {transform_indices = @transform_1, window_bounds = array<i64: 2, 8>}, {pipeline_mode = #tpu.pipeline_mode<synchronous>, transform_indices = @transform_2, window_bounds = array<i64: 32, 64>}, {pipeline_mode = #tpu.pipeline_mode<synchronous>, transform_indices = @transform_3, window_bounds = array<i64: 1, 64>}, {transform_indices = @transform_4, window_bounds = array<i64: 2, 64>}]} {
    %c0 = arith.constant 0 : index
    %c0_0 = arith.constant 0 : index
    %0 = vector.load %arg1[%c0, %c0_0] : memref<16x32xf32, #tpu.memory_space<vmem>>, vector<16x32xf32>
    %c0_1 = arith.constant 0 : index
    %c0_2 = arith.constant 0 : index
    %1 = vector.load %arg3[%c0_1, %c0_2] : memref<32x64xf32, #tpu.memory_space<vmem>>, vector<32x64xf32>
    %cst = arith.constant dense<0.000000e+00> : vector<16x64xf32>
    %2 = tpu.matmul %0, %1, %cst {dimension_numbers = #tpu.dot_dimension_numbers<[1], [0], [0], [1], [0, 0, 1, 1], [], []>} : vector<16x32xf32>, vector<32x64xf32>, vector<16x64xf32> -> vector<16x64xf32>
    %c0_3 = arith.constant 0 : index
    %c0_4 = arith.constant 0 : index
    %3 = vector.load %arg4[%c0_3, %c0_4] : memref<1x64xf32, #tpu.memory_space<vmem>>, vector<1x64xf32>
    %4 = vector.broadcast %3 : vector<1x64xf32> to vector<16x64xf32>
    %5 = arith.addf %2, %4 : vector<16x64xf32>
    %cst_5 = arith.constant 0.000000e+00 : f32
    %6 = vector.broadcast %cst_5 : f32 to vector<16x64xf32>
    %7 = arith.cmpf oge, %5, %6 : vector<16x64xf32>
    %cst_6 = arith.constant 0.00999999977 : f32
    %8 = vector.broadcast %cst_6 : f32 to vector<16x64xf32>
    %9 = arith.mulf %8, %5 : vector<16x64xf32>
    %10 = arith.select %7, %5, %9 : vector<16x64xi1>, vector<16x64xf32>
    %11 = vector.shape_cast %10 : vector<16x64xf32> to vector<2x8x64xf32>
    %c0_7 = arith.constant 0 : index
    %c0_8 = arith.constant 0 : index
    %12 = vector.load %arg2[%c0_7, %c0_8] : memref<2x8xf32, #tpu.memory_space<vmem>>, vector<2x8xf32>
    %cst_9 = arith.constant 5.000000e-01 : f32
    %13 = vector.broadcast %cst_9 : f32 to vector<2x8xf32>
    %14 = arith.cmpf olt, %12, %13 : vector<2x8xf32>
    %cst_10 = arith.constant -1.000000e+20 : f32
    %15 = vector.broadcast %cst_10 : f32 to vector<2x8xf32>
    %16 = arith.select %14, %15, %12 : vector<2x8xi1>, vector<2x8xf32>
    %17 = vector.extract_strided_slice %11 {offsets = [0, 0, 0], sizes = [2, 8, 16], strides = [1, 1, 1]} : vector<2x8x64xf32> to vector<2x8x16xf32>
    %cst_11 = arith.constant 0.000000e+00 : f32
    %18 = vector.broadcast %cst_11 : f32 to vector<2x8xf32>
    %19 = arith.mulf %18, %16 : vector<2x8xf32>
    %cst_12 = arith.constant dense<0xFF800000> : vector<2xf32>
    %20 = vector.multi_reduction <maximumf>, %19, %cst_12 [1] : vector<2x8xf32> to vector<2xf32>
    %21 = vector.shape_cast %20 : vector<2xf32> to vector<2x1xf32>
    %22 = vector.broadcast %21 : vector<2x1xf32> to vector<2x8xf32>
    %23 = arith.subf %19, %22 : vector<2x8xf32>
    %24 = math.exp %23 : vector<2x8xf32>
    %cst_13 = arith.constant dense<0.000000e+00> : vector<2xf32>
    %25 = vector.multi_reduction <add>, %24, %cst_13 [1] : vector<2x8xf32> to vector<2xf32>
    %26 = vector.shape_cast %25 : vector<2xf32> to vector<2x1xf32>
    %27 = tpu.reciprocal %26 {approx = true} : vector<2x1xf32> -> vector<2x1xf32>
    %28 = vector.broadcast %27 : vector<2x1xf32> to vector<2x8xf32>
    %29 = arith.mulf %24, %28 : vector<2x8xf32>
    %30 = arith.mulf %29, %12 : vector<2x8xf32>
    %31 = vector.shape_cast %30 : vector<2x8xf32> to vector<2x8x1xf32>
    %32 = vector.broadcast %31 : vector<2x8x1xf32> to vector<2x8x16xf32>
    %33 = arith.mulf %32, %17 : vector<2x8x16xf32>
    %cst_14 = arith.constant dense<0.000000e+00> : vector<2x16xf32>
    %34 = vector.multi_reduction <add>, %33, %cst_14 [1] : vector<2x8x16xf32> to vector<2x16xf32>
    %35 = math.tanh %34 : vector<2x16xf32>
    %36 = vector.shape_cast %35 : vector<2x16xf32> to vector<2x1x16xf32>
    %37 = vector.broadcast %36 : vector<2x1x16xf32> to vector<2x8x16xf32>
    %38 = arith.mulf %17, %37 : vector<2x8x16xf32>
    %cst_15 = arith.constant dense<0.000000e+00> : vector<2x8xf32>
    %39 = vector.multi_reduction <add>, %38, %cst_15 [2] : vector<2x8x16xf32> to vector<2x8xf32>
    %40 = arith.addf %19, %39 : vector<2x8xf32>
    %41 = arith.mulf %40, %16 : vector<2x8xf32>
    %cst_16 = arith.constant dense<0xFF800000> : vector<2xf32>
    %42 = vector.multi_reduction <maximumf>, %41, %cst_16 [1] : vector<2x8xf32> to vector<2xf32>
    %43 = vector.shape_cast %42 : vector<2xf32> to vector<2x1xf32>
    %44 = vector.broadcast %43 : vector<2x1xf32> to vector<2x8xf32>
    %45 = arith.subf %41, %44 : vector<2x8xf32>
    %46 = math.exp %45 : vector<2x8xf32>
    %cst_17 = arith.constant dense<0.000000e+00> : vector<2xf32>
    %47 = vector.multi_reduction <add>, %46, %cst_17 [1] : vector<2x8xf32> to vector<2xf32>
    %48 = vector.shape_cast %47 : vector<2xf32> to vector<2x1xf32>
    %49 = tpu.reciprocal %48 {approx = true} : vector<2x1xf32> -> vector<2x1xf32>
    %50 = vector.broadcast %49 : vector<2x1xf32> to vector<2x8xf32>
    %51 = arith.mulf %46, %50 : vector<2x8xf32>
    %52 = arith.mulf %51, %12 : vector<2x8xf32>
    %53 = vector.shape_cast %52 : vector<2x8xf32> to vector<2x8x1xf32>
    %54 = vector.broadcast %53 : vector<2x8x1xf32> to vector<2x8x16xf32>
    %55 = arith.mulf %54, %17 : vector<2x8x16xf32>
    %cst_18 = arith.constant dense<0.000000e+00> : vector<2x16xf32>
    %56 = vector.multi_reduction <add>, %55, %cst_18 [1] : vector<2x8x16xf32> to vector<2x16xf32>
    %57 = math.tanh %56 : vector<2x16xf32>
    %58 = vector.shape_cast %57 : vector<2x16xf32> to vector<2x1x16xf32>
    %59 = vector.broadcast %58 : vector<2x1x16xf32> to vector<2x8x16xf32>
    %60 = arith.mulf %17, %59 : vector<2x8x16xf32>
    %cst_19 = arith.constant dense<0.000000e+00> : vector<2x8xf32>
    %61 = vector.multi_reduction <add>, %60, %cst_19 [2] : vector<2x8x16xf32> to vector<2x8xf32>
    %62 = arith.addf %41, %61 : vector<2x8xf32>
    %63 = arith.mulf %62, %16 : vector<2x8xf32>
    %cst_20 = arith.constant dense<0xFF800000> : vector<2xf32>
    %64 = vector.multi_reduction <maximumf>, %63, %cst_20 [1] : vector<2x8xf32> to vector<2xf32>
    %65 = vector.shape_cast %64 : vector<2xf32> to vector<2x1xf32>
    %66 = vector.broadcast %65 : vector<2x1xf32> to vector<2x8xf32>
    %67 = arith.subf %63, %66 : vector<2x8xf32>
    %68 = math.exp %67 : vector<2x8xf32>
    %cst_21 = arith.constant dense<0.000000e+00> : vector<2xf32>
    %69 = vector.multi_reduction <add>, %68, %cst_21 [1] : vector<2x8xf32> to vector<2xf32>
    %70 = vector.shape_cast %69 : vector<2xf32> to vector<2x1xf32>
    %71 = tpu.reciprocal %70 {approx = true} : vector<2x1xf32> -> vector<2x1xf32>
    %72 = vector.broadcast %71 : vector<2x1xf32> to vector<2x8xf32>
    %73 = arith.mulf %68, %72 : vector<2x8xf32>
    %74 = arith.mulf %73, %12 : vector<2x8xf32>
    %75 = vector.shape_cast %74 : vector<2x8xf32> to vector<2x8x1xf32>
    %76 = vector.broadcast %75 : vector<2x8x1xf32> to vector<2x8x16xf32>
    %77 = arith.mulf %76, %17 : vector<2x8x16xf32>
    %cst_22 = arith.constant dense<0.000000e+00> : vector<2x16xf32>
    %78 = vector.multi_reduction <add>, %77, %cst_22 [1] : vector<2x8x16xf32> to vector<2x16xf32>
    %79 = math.tanh %78 : vector<2x16xf32>
    %80 = vector.extract_strided_slice %11 {offsets = [0, 0, 16], sizes = [2, 8, 16], strides = [1, 1, 1]} : vector<2x8x64xf32> to vector<2x8x16xf32>
    %cst_23 = arith.constant 0.000000e+00 : f32
    %81 = vector.broadcast %cst_23 : f32 to vector<2x8xf32>
    %82 = arith.mulf %81, %16 : vector<2x8xf32>
    %cst_24 = arith.constant dense<0xFF800000> : vector<2xf32>
    %83 = vector.multi_reduction <maximumf>, %82, %cst_24 [1] : vector<2x8xf32> to vector<2xf32>
    %84 = vector.shape_cast %83 : vector<2xf32> to vector<2x1xf32>
    %85 = vector.broadcast %84 : vector<2x1xf32> to vector<2x8xf32>
    %86 = arith.subf %82, %85 : vector<2x8xf32>
    %87 = math.exp %86 : vector<2x8xf32>
    %cst_25 = arith.constant dense<0.000000e+00> : vector<2xf32>
    %88 = vector.multi_reduction <add>, %87, %cst_25 [1] : vector<2x8xf32> to vector<2xf32>
    %89 = vector.shape_cast %88 : vector<2xf32> to vector<2x1xf32>
    %90 = tpu.reciprocal %89 {approx = true} : vector<2x1xf32> -> vector<2x1xf32>
    %91 = vector.broadcast %90 : vector<2x1xf32> to vector<2x8xf32>
    %92 = arith.mulf %87, %91 : vector<2x8xf32>
    %93 = arith.mulf %92, %12 : vector<2x8xf32>
    %94 = vector.shape_cast %93 : vector<2x8xf32> to vector<2x8x1xf32>
    %95 = vector.broadcast %94 : vector<2x8x1xf32> to vector<2x8x16xf32>
    %96 = arith.mulf %95, %80 : vector<2x8x16xf32>
    %cst_26 = arith.constant dense<0.000000e+00> : vector<2x16xf32>
    %97 = vector.multi_reduction <add>, %96, %cst_26 [1] : vector<2x8x16xf32> to vector<2x16xf32>
    %98 = math.tanh %97 : vector<2x16xf32>
    %99 = vector.shape_cast %98 : vector<2x16xf32> to vector<2x1x16xf32>
    %100 = vector.broadcast %99 : vector<2x1x16xf32> to vector<2x8x16xf32>
    %101 = arith.mulf %80, %100 : vector<2x8x16xf32>
    %cst_27 = arith.constant dense<0.000000e+00> : vector<2x8xf32>
    %102 = vector.multi_reduction <add>, %101, %cst_27 [2] : vector<2x8x16xf32> to vector<2x8xf32>
    %103 = arith.addf %82, %102 : vector<2x8xf32>
    %104 = arith.mulf %103, %16 : vector<2x8xf32>
    %cst_28 = arith.constant dense<0xFF800000> : vector<2xf32>
    %105 = vector.multi_reduction <maximumf>, %104, %cst_28 [1] : vector<2x8xf32> to vector<2xf32>
    %106 = vector.shape_cast %105 : vector<2xf32> to vector<2x1xf32>
    %107 = vector.broadcast %106 : vector<2x1xf32> to vector<2x8xf32>
    %108 = arith.subf %104, %107 : vector<2x8xf32>
    %109 = math.exp %108 : vector<2x8xf32>
    %cst_29 = arith.constant dense<0.000000e+00> : vector<2xf32>
    %110 = vector.multi_reduction <add>, %109, %cst_29 [1] : vector<2x8xf32> to vector<2xf32>
    %111 = vector.shape_cast %110 : vector<2xf32> to vector<2x1xf32>
    %112 = tpu.reciprocal %111 {approx = true} : vector<2x1xf32> -> vector<2x1xf32>
    %113 = vector.broadcast %112 : vector<2x1xf32> to vector<2x8xf32>
    %114 = arith.mulf %109, %113 : vector<2x8xf32>
    %115 = arith.mulf %114, %12 : vector<2x8xf32>
    %116 = vector.shape_cast %115 : vector<2x8xf32> to vector<2x8x1xf32>
    %117 = vector.broadcast %116 : vector<2x8x1xf32> to vector<2x8x16xf32>
    %118 = arith.mulf %117, %80 : vector<2x8x16xf32>
    %cst_30 = arith.constant dense<0.000000e+00> : vector<2x16xf32>
    %119 = vector.multi_reduction <add>, %118, %cst_30 [1] : vector<2x8x16xf32> to vector<2x16xf32>
    %120 = math.tanh %119 : vector<2x16xf32>
    %121 = vector.shape_cast %120 : vector<2x16xf32> to vector<2x1x16xf32>
    %122 = vector.broadcast %121 : vector<2x1x16xf32> to vector<2x8x16xf32>
    %123 = arith.mulf %80, %122 : vector<2x8x16xf32>
    %cst_31 = arith.constant dense<0.000000e+00> : vector<2x8xf32>
    %124 = vector.multi_reduction <add>, %123, %cst_31 [2] : vector<2x8x16xf32> to vector<2x8xf32>
    %125 = arith.addf %104, %124 : vector<2x8xf32>
    %126 = arith.mulf %125, %16 : vector<2x8xf32>
    %cst_32 = arith.constant dense<0xFF800000> : vector<2xf32>
    %127 = vector.multi_reduction <maximumf>, %126, %cst_32 [1] : vector<2x8xf32> to vector<2xf32>
    %128 = vector.shape_cast %127 : vector<2xf32> to vector<2x1xf32>
    %129 = vector.broadcast %128 : vector<2x1xf32> to vector<2x8xf32>
    %130 = arith.subf %126, %129 : vector<2x8xf32>
    %131 = math.exp %130 : vector<2x8xf32>
    %cst_33 = arith.constant dense<0.000000e+00> : vector<2xf32>
    %132 = vector.multi_reduction <add>, %131, %cst_33 [1] : vector<2x8xf32> to vector<2xf32>
    %133 = vector.shape_cast %132 : vector<2xf32> to vector<2x1xf32>
    %134 = tpu.reciprocal %133 {approx = true} : vector<2x1xf32> -> vector<2x1xf32>
    %135 = vector.broadcast %134 : vector<2x1xf32> to vector<2x8xf32>
    %136 = arith.mulf %131, %135 : vector<2x8xf32>
    %137 = arith.mulf %136, %12 : vector<2x8xf32>
    %138 = vector.shape_cast %137 : vector<2x8xf32> to vector<2x8x1xf32>
    %139 = vector.broadcast %138 : vector<2x8x1xf32> to vector<2x8x16xf32>
    %140 = arith.mulf %139, %80 : vector<2x8x16xf32>
    %cst_34 = arith.constant dense<0.000000e+00> : vector<2x16xf32>
    %141 = vector.multi_reduction <add>, %140, %cst_34 [1] : vector<2x8x16xf32> to vector<2x16xf32>
    %142 = math.tanh %141 : vector<2x16xf32>
    %143 = vector.extract_strided_slice %11 {offsets = [0, 0, 32], sizes = [2, 8, 16], strides = [1, 1, 1]} : vector<2x8x64xf32> to vector<2x8x16xf32>
    %cst_35 = arith.constant 0.000000e+00 : f32
    %144 = vector.broadcast %cst_35 : f32 to vector<2x8xf32>
    %145 = arith.mulf %144, %16 : vector<2x8xf32>
    %cst_36 = arith.constant dense<0xFF800000> : vector<2xf32>
    %146 = vector.multi_reduction <maximumf>, %145, %cst_36 [1] : vector<2x8xf32> to vector<2xf32>
    %147 = vector.shape_cast %146 : vector<2xf32> to vector<2x1xf32>
    %148 = vector.broadcast %147 : vector<2x1xf32> to vector<2x8xf32>
    %149 = arith.subf %145, %148 : vector<2x8xf32>
    %150 = math.exp %149 : vector<2x8xf32>
    %cst_37 = arith.constant dense<0.000000e+00> : vector<2xf32>
    %151 = vector.multi_reduction <add>, %150, %cst_37 [1] : vector<2x8xf32> to vector<2xf32>
    %152 = vector.shape_cast %151 : vector<2xf32> to vector<2x1xf32>
    %153 = tpu.reciprocal %152 {approx = true} : vector<2x1xf32> -> vector<2x1xf32>
    %154 = vector.broadcast %153 : vector<2x1xf32> to vector<2x8xf32>
    %155 = arith.mulf %150, %154 : vector<2x8xf32>
    %156 = arith.mulf %155, %12 : vector<2x8xf32>
    %157 = vector.shape_cast %156 : vector<2x8xf32> to vector<2x8x1xf32>
    %158 = vector.broadcast %157 : vector<2x8x1xf32> to vector<2x8x16xf32>
    %159 = arith.mulf %158, %143 : vector<2x8x16xf32>
    %cst_38 = arith.constant dense<0.000000e+00> : vector<2x16xf32>
    %160 = vector.multi_reduction <add>, %159, %cst_38 [1] : vector<2x8x16xf32> to vector<2x16xf32>
    %161 = math.tanh %160 : vector<2x16xf32>
    %162 = vector.shape_cast %161 : vector<2x16xf32> to vector<2x1x16xf32>
    %163 = vector.broadcast %162 : vector<2x1x16xf32> to vector<2x8x16xf32>
    %164 = arith.mulf %143, %163 : vector<2x8x16xf32>
    %cst_39 = arith.constant dense<0.000000e+00> : vector<2x8xf32>
    %165 = vector.multi_reduction <add>, %164, %cst_39 [2] : vector<2x8x16xf32> to vector<2x8xf32>
    %166 = arith.addf %145, %165 : vector<2x8xf32>
    %167 = arith.mulf %166, %16 : vector<2x8xf32>
    %cst_40 = arith.constant dense<0xFF800000> : vector<2xf32>
    %168 = vector.multi_reduction <maximumf>, %167, %cst_40 [1] : vector<2x8xf32> to vector<2xf32>
    %169 = vector.shape_cast %168 : vector<2xf32> to vector<2x1xf32>
    %170 = vector.broadcast %169 : vector<2x1xf32> to vector<2x8xf32>
    %171 = arith.subf %167, %170 : vector<2x8xf32>
    %172 = math.exp %171 : vector<2x8xf32>
    %cst_41 = arith.constant dense<0.000000e+00> : vector<2xf32>
    %173 = vector.multi_reduction <add>, %172, %cst_41 [1] : vector<2x8xf32> to vector<2xf32>
    %174 = vector.shape_cast %173 : vector<2xf32> to vector<2x1xf32>
    %175 = tpu.reciprocal %174 {approx = true} : vector<2x1xf32> -> vector<2x1xf32>
    %176 = vector.broadcast %175 : vector<2x1xf32> to vector<2x8xf32>
    %177 = arith.mulf %172, %176 : vector<2x8xf32>
    %178 = arith.mulf %177, %12 : vector<2x8xf32>
    %179 = vector.shape_cast %178 : vector<2x8xf32> to vector<2x8x1xf32>
    %180 = vector.broadcast %179 : vector<2x8x1xf32> to vector<2x8x16xf32>
    %181 = arith.mulf %180, %143 : vector<2x8x16xf32>
    %cst_42 = arith.constant dense<0.000000e+00> : vector<2x16xf32>
    %182 = vector.multi_reduction <add>, %181, %cst_42 [1] : vector<2x8x16xf32> to vector<2x16xf32>
    %183 = math.tanh %182 : vector<2x16xf32>
    %184 = vector.shape_cast %183 : vector<2x16xf32> to vector<2x1x16xf32>
    %185 = vector.broadcast %184 : vector<2x1x16xf32> to vector<2x8x16xf32>
    %186 = arith.mulf %143, %185 : vector<2x8x16xf32>
    %cst_43 = arith.constant dense<0.000000e+00> : vector<2x8xf32>
    %187 = vector.multi_reduction <add>, %186, %cst_43 [2] : vector<2x8x16xf32> to vector<2x8xf32>
    %188 = arith.addf %167, %187 : vector<2x8xf32>
    %189 = arith.mulf %188, %16 : vector<2x8xf32>
    %cst_44 = arith.constant dense<0xFF800000> : vector<2xf32>
    %190 = vector.multi_reduction <maximumf>, %189, %cst_44 [1] : vector<2x8xf32> to vector<2xf32>
    %191 = vector.shape_cast %190 : vector<2xf32> to vector<2x1xf32>
    %192 = vector.broadcast %191 : vector<2x1xf32> to vector<2x8xf32>
    %193 = arith.subf %189, %192 : vector<2x8xf32>
    %194 = math.exp %193 : vector<2x8xf32>
    %cst_45 = arith.constant dense<0.000000e+00> : vector<2xf32>
    %195 = vector.multi_reduction <add>, %194, %cst_45 [1] : vector<2x8xf32> to vector<2xf32>
    %196 = vector.shape_cast %195 : vector<2xf32> to vector<2x1xf32>
    %197 = tpu.reciprocal %196 {approx = true} : vector<2x1xf32> -> vector<2x1xf32>
    %198 = vector.broadcast %197 : vector<2x1xf32> to vector<2x8xf32>
    %199 = arith.mulf %194, %198 : vector<2x8xf32>
    %200 = arith.mulf %199, %12 : vector<2x8xf32>
    %201 = vector.shape_cast %200 : vector<2x8xf32> to vector<2x8x1xf32>
    %202 = vector.broadcast %201 : vector<2x8x1xf32> to vector<2x8x16xf32>
    %203 = arith.mulf %202, %143 : vector<2x8x16xf32>
    %cst_46 = arith.constant dense<0.000000e+00> : vector<2x16xf32>
    %204 = vector.multi_reduction <add>, %203, %cst_46 [1] : vector<2x8x16xf32> to vector<2x16xf32>
    %205 = math.tanh %204 : vector<2x16xf32>
    %206 = vector.extract_strided_slice %11 {offsets = [0, 0, 48], sizes = [2, 8, 16], strides = [1, 1, 1]} : vector<2x8x64xf32> to vector<2x8x16xf32>
    %cst_47 = arith.constant 0.000000e+00 : f32
    %207 = vector.broadcast %cst_47 : f32 to vector<2x8xf32>
    %208 = arith.mulf %207, %16 : vector<2x8xf32>
    %cst_48 = arith.constant dense<0xFF800000> : vector<2xf32>
    %209 = vector.multi_reduction <maximumf>, %208, %cst_48 [1] : vector<2x8xf32> to vector<2xf32>
    %210 = vector.shape_cast %209 : vector<2xf32> to vector<2x1xf32>
    %211 = vector.broadcast %210 : vector<2x1xf32> to vector<2x8xf32>
    %212 = arith.subf %208, %211 : vector<2x8xf32>
    %213 = math.exp %212 : vector<2x8xf32>
    %cst_49 = arith.constant dense<0.000000e+00> : vector<2xf32>
    %214 = vector.multi_reduction <add>, %213, %cst_49 [1] : vector<2x8xf32> to vector<2xf32>
    %215 = vector.shape_cast %214 : vector<2xf32> to vector<2x1xf32>
    %216 = tpu.reciprocal %215 {approx = true} : vector<2x1xf32> -> vector<2x1xf32>
    %217 = vector.broadcast %216 : vector<2x1xf32> to vector<2x8xf32>
    %218 = arith.mulf %213, %217 : vector<2x8xf32>
    %219 = arith.mulf %218, %12 : vector<2x8xf32>
    %220 = vector.shape_cast %219 : vector<2x8xf32> to vector<2x8x1xf32>
    %221 = vector.broadcast %220 : vector<2x8x1xf32> to vector<2x8x16xf32>
    %222 = arith.mulf %221, %206 : vector<2x8x16xf32>
    %cst_50 = arith.constant dense<0.000000e+00> : vector<2x16xf32>
    %223 = vector.multi_reduction <add>, %222, %cst_50 [1] : vector<2x8x16xf32> to vector<2x16xf32>
    %224 = math.tanh %223 : vector<2x16xf32>
    %225 = vector.shape_cast %224 : vector<2x16xf32> to vector<2x1x16xf32>
    %226 = vector.broadcast %225 : vector<2x1x16xf32> to vector<2x8x16xf32>
    %227 = arith.mulf %206, %226 : vector<2x8x16xf32>
    %cst_51 = arith.constant dense<0.000000e+00> : vector<2x8xf32>
    %228 = vector.multi_reduction <add>, %227, %cst_51 [2] : vector<2x8x16xf32> to vector<2x8xf32>
    %229 = arith.addf %208, %228 : vector<2x8xf32>
    %230 = arith.mulf %229, %16 : vector<2x8xf32>
    %cst_52 = arith.constant dense<0xFF800000> : vector<2xf32>
    %231 = vector.multi_reduction <maximumf>, %230, %cst_52 [1] : vector<2x8xf32> to vector<2xf32>
    %232 = vector.shape_cast %231 : vector<2xf32> to vector<2x1xf32>
    %233 = vector.broadcast %232 : vector<2x1xf32> to vector<2x8xf32>
    %234 = arith.subf %230, %233 : vector<2x8xf32>
    %235 = math.exp %234 : vector<2x8xf32>
    %cst_53 = arith.constant dense<0.000000e+00> : vector<2xf32>
    %236 = vector.multi_reduction <add>, %235, %cst_53 [1] : vector<2x8xf32> to vector<2xf32>
    %237 = vector.shape_cast %236 : vector<2xf32> to vector<2x1xf32>
    %238 = tpu.reciprocal %237 {approx = true} : vector<2x1xf32> -> vector<2x1xf32>
    %239 = vector.broadcast %238 : vector<2x1xf32> to vector<2x8xf32>
    %240 = arith.mulf %235, %239 : vector<2x8xf32>
    %241 = arith.mulf %240, %12 : vector<2x8xf32>
    %242 = vector.shape_cast %241 : vector<2x8xf32> to vector<2x8x1xf32>
    %243 = vector.broadcast %242 : vector<2x8x1xf32> to vector<2x8x16xf32>
    %244 = arith.mulf %243, %206 : vector<2x8x16xf32>
    %cst_54 = arith.constant dense<0.000000e+00> : vector<2x16xf32>
    %245 = vector.multi_reduction <add>, %244, %cst_54 [1] : vector<2x8x16xf32> to vector<2x16xf32>
    %246 = math.tanh %245 : vector<2x16xf32>
    %247 = vector.shape_cast %246 : vector<2x16xf32> to vector<2x1x16xf32>
    %248 = vector.broadcast %247 : vector<2x1x16xf32> to vector<2x8x16xf32>
    %249 = arith.mulf %206, %248 : vector<2x8x16xf32>
    %cst_55 = arith.constant dense<0.000000e+00> : vector<2x8xf32>
    %250 = vector.multi_reduction <add>, %249, %cst_55 [2] : vector<2x8x16xf32> to vector<2x8xf32>
    %251 = arith.addf %230, %250 : vector<2x8xf32>
    %252 = arith.mulf %251, %16 : vector<2x8xf32>
    %cst_56 = arith.constant dense<0xFF800000> : vector<2xf32>
    %253 = vector.multi_reduction <maximumf>, %252, %cst_56 [1] : vector<2x8xf32> to vector<2xf32>
    %254 = vector.shape_cast %253 : vector<2xf32> to vector<2x1xf32>
    %255 = vector.broadcast %254 : vector<2x1xf32> to vector<2x8xf32>
    %256 = arith.subf %252, %255 : vector<2x8xf32>
    %257 = math.exp %256 : vector<2x8xf32>
    %cst_57 = arith.constant dense<0.000000e+00> : vector<2xf32>
    %258 = vector.multi_reduction <add>, %257, %cst_57 [1] : vector<2x8xf32> to vector<2xf32>
    %259 = vector.shape_cast %258 : vector<2xf32> to vector<2x1xf32>
    %260 = tpu.reciprocal %259 {approx = true} : vector<2x1xf32> -> vector<2x1xf32>
    %261 = vector.broadcast %260 : vector<2x1xf32> to vector<2x8xf32>
    %262 = arith.mulf %257, %261 : vector<2x8xf32>
    %263 = arith.mulf %262, %12 : vector<2x8xf32>
    %264 = vector.shape_cast %263 : vector<2x8xf32> to vector<2x8x1xf32>
    %265 = vector.broadcast %264 : vector<2x8x1xf32> to vector<2x8x16xf32>
    %266 = arith.mulf %265, %206 : vector<2x8x16xf32>
    %cst_58 = arith.constant dense<0.000000e+00> : vector<2x16xf32>
    %267 = vector.multi_reduction <add>, %266, %cst_58 [1] : vector<2x8x16xf32> to vector<2x16xf32>
    %268 = math.tanh %267 : vector<2x16xf32>
    %269 = tpu.concatenate %79, %142, %205, %268 in 1 : vector<2x16xf32>, vector<2x16xf32>, vector<2x16xf32>, vector<2x16xf32> -> vector<2x64xf32>
    %c0_59 = arith.constant 0 : index
    %c0_60 = arith.constant 0 : index
    %270 = vector.load %arg5[%c0_59, %c0_60] : memref<2x64xf32, #tpu.memory_space<vmem>>, vector<2x64xf32>
    tpu.vector_store %arg5[%c0_59, %c0_60], %269 {strides = array<i32>} : memref<2x64xf32, #tpu.memory_space<vmem>>, vector<2x64xf32>,
    return
  }
  func.func @transform_0(%arg0: i32) -> (i32, i32) {
    %c0_i32 = arith.constant 0 : i32
    %c0_i32_0 = arith.constant 0 : i32
    return %arg0, %c0_i32 : i32, i32
  }
  func.func @transform_1(%arg0: i32) -> (i32, i32) {
    %c0_i32 = arith.constant 0 : i32
    %c0_i32_0 = arith.constant 0 : i32
    return %arg0, %c0_i32 : i32, i32
  }
  func.func @transform_2(%arg0: i32) -> (i32, i32) {
    %c0_i32 = arith.constant 0 : i32
    %c0_i32_0 = arith.constant 0 : i32
    %c0_i32_1 = arith.constant 0 : i32
    return %c0_i32, %c0_i32_0 : i32, i32
  }
  func.func @transform_3(%arg0: i32) -> (i32, i32) {
    %c0_i32 = arith.constant 0 : i32
    %c0_i32_0 = arith.constant 0 : i32
    %c0_i32_1 = arith.constant 0 : i32
    return %c0_i32, %c0_i32_0 : i32, i32
  }
  func.func @transform_4(%arg0: i32) -> (i32, i32) {
    %c0_i32 = arith.constant 0 : i32
    %c0_i32_0 = arith.constant 0 : i32
    return %arg0, %c0_i32 : i32, i32
  }
}

</mosaic_0001>

<bundles_post_ra>
// kernel: tpu_custom_call.1
= control target key start
LH: loop header
LB: loop body
LE: loop exit
PB: predicated region body
PF: predicated region fallthrough
CT: control target
= control target key end

     0   :  { %9 = vsyncpa [#allocation3], 0  ;;  %s1360_s0 = inlined_call_operand.hbm [shape: f32[16,32], index: 0, kind: input, shape index: {}]   ;;  %s1361_s1 = inlined_call_operand.vmem [shape: f32[2,8], index: 1, kind: input, shape index: {}]   ;;  %s1362_s2 = inlined_call_operand.hbm [shape: f32[32,64], index: 2, kind: input, shape index: {}]   ;;  %s1363_s3 = inlined_call_operand.vmem [shape: f32[1,64], index: 3, kind: input, shape index: {}]   ;;  %s1364_s4 = inlined_call_operand.hbm [shape: f32[2,64], index: 4, kind: output, shape index: {}]  }
   0x1   :  { %10 = vsyncpa [#allocation6], 0 }
   0x2   :  { %11 = vsyncpa [#allocation4], 0  ;;  %s1057_s15 = smov [#allocation2]   ;;  %s985_s19 = scalar_lea.hbm %s1360_s0, 256 }
   0x3   :  { %s17_s16 = sshll.u32 %s1057_s15, 4  ;;  %p986_p0 = scmp.ne.s32.totalorder %s1360_s0, %s985_s19  ;;  %s18_s16 = int_to_ptr.vmem [resolvable:$true] %s17_s16 }
   0x4   :  { %p989_p1 = scmp.lt.u32.totalorder %s985_s19, %s1360_s0 }
   0x6   :  { %p991_p2 = pnand %p989_p1, %p986_p0 }
   0x8   :  { %994 = shalt.err (!%p991_p2)
}
   0x9   :  { %s995_s24 = scalar_lea.vmem %s18_s16, 256  ;;  %p1000_p4 = scmp.lt.s32.totalorder %s18_s16, %s18_s16 }
   0xa   :  { %p996_p3 = scmp.ne.s32.totalorder %s18_s16, %s995_s24  ;;  %p1001_p5 = scmp.lt.s32.totalorder %s995_s24, %s995_s24 }
   0xc   :  { %p1002_p6 = por %p1001_p5, %p1000_p4 }
   0xe   :  { %p1003_p7 = pnand %p1002_p6, %p996_p3 }
  0x10   :  { %1006 = shalt.err (!%p1003_p7)
}
  0x11   :  { %s1058_s25 = smov 128   ;;  %s1059_s26 = smov 8  }
  0x12   :  { %23 = dma.hbm_to_vmem [thread:$0]  %s1360_s0, 256, %s18_s16, [#allocation3], %s1058_s25, %s1058_s25, %s1059_s26  }
  0x13   :  { %s1060_s29 = smov [#allocation5]   ;;  %s1007_s7 = scalar_lea.hbm %s1362_s2, 512 }
  0x14   :  { %s31_s30 = sshll.u32 %s1060_s29, 4  ;;  %p1008_p8 = scmp.ne.s32.totalorder %s1362_s2, %s1007_s7  ;;  %s32_s30 = int_to_ptr.vmem [resolvable:$true] %s31_s30 }
  0x15   :  { %p1011_p9 = scmp.lt.u32.totalorder %s1007_s7, %s1362_s2 }
  0x17   :  { %p1013_p10 = pnand %p1011_p9, %p1008_p8 }
  0x19   :  { %1016 = shalt.err (!%p1013_p10)
}
  0x1a   :  { %s1017_s12 = scalar_lea.vmem %s32_s30, 512  ;;  %p1022_p12 = scmp.lt.s32.totalorder %s32_s30, %s32_s30 }
  0x1b   :  { %p1018_p11 = scmp.ne.s32.totalorder %s32_s30, %s1017_s12  ;;  %p1023_p13 = scmp.lt.s32.totalorder %s1017_s12, %s1017_s12 }
  0x1d   :  { %p1024_p0 = por %p1023_p13, %p1022_p12 }
  0x1f   :  { %p1025_p1 = pnand %p1024_p0, %p1018_p11 }
  0x21   :  { %1028 = shalt.err (!%p1025_p1)
}
  0x22   :  { %37 = dma.hbm_to_vmem [thread:$0]  %s1362_s2, 512, %s32_s30, [#allocation6], %s1058_s25, %s1058_s25, %s1059_s26  }
  0x23   :  { %1051 = dma.done.wait [#allocation3], 256  }
  0x24   :  { %1052 = vsyncadd [#allocation3], 4294967040 }
  0x25   :  { %1053 = dma.done.wait [#allocation6], 512  }
  0x26   :  { %1054 = vsyncadd [#allocation6], 4294966784  ;;  %v1117_v0 = vld [vmem:[%s1361_s1] sm:$0x3]  ;;  %vm151_vm1 = vcmask 58368   ;;  %v48_v4 = vld [vmem:[#allocation5] sm:$0xff]  ;;  %v164_v17 = vlaneseq }
  0x27   :  { %vm148_vm0 = vcmp.lt.f32.partialorder %v1117_v0, 0.5  ;;  %v49_v5 = vld [vmem:[#allocation5 + $0x8] sm:$0xff]  ;;  %v50_v6 = vld [vmem:[#allocation5 + $0x10] sm:$0xff]  ;;  %vm59_vm2 = vcmask 261120   ;;  %v51_v8 = vld [vmem:[#allocation5 + $0x18] sm:$0xff]  ;;  %vm332_vm4 = vcmask 261248  }
  0x28   :  { %v1121_v1 = vsel %vm148_vm0, -1e+20, %v1117_v0  ;;  %v885_v7 = vpack.c.bf16 %v49_v5, %v48_v4  ;;  %v46_v9 = vld [vmem:[#allocation2] sm:$0xff]  ;;  %v889_v10 = vpack.c.bf16 %v51_v8, %v50_v6  ;;  %v47_v11 = vld [vmem:[#allocation2 + $0x8] sm:$0xff]  ;;  %v165_v18 = vshrl.u32 %v164_v17, 7  ;;  %s1062_s16 = smov 96  }
  0x29   :  { %v1124_v2 = vmul.f32 0.0, %v1121_v1  ;;  %882 = vmatprep.mubr.msk.f32.mxu0 %vm59_vm2, %v46_v9  ;;  %v208_v19 = vand.u32 127, %v164_v17  ;;  %v865_v31 = vld [vmem:[%s1363_s3] ss:$0 sm:$0xff]  ;;  %vm497_vm5 = vcmask 392448   ;;  %vm662_vm6 = vcmask 523648  }
  0x2a   :  { %886 = vmatprep.subr.bf16.mxu0 %v885_v7  ;;  %v1134_v26 = vsub.s32 0, %v165_v18  ;;  %v1138_v29 = vsub.s32 1, %v165_v18  ;;  %s1061_s3 = smov 112   ;;  %s1063_s17 = smov 80   ;;  %vm180_vm8 = vcmask 130048   ;;  %vm217_vm9 = vcmask 1041409  }
  0x2b   :  { %v152_v3 = vsel %vm151_vm1, %v1124_v2, -inf  ;;  %888 = vmatpush3.bf16.msra.mxu0 %v885_v7  ;;  %v1132_v20 = vsub.s32 %v208_v19, %v165_v18  ;;  %s1064_s18 = smov [#allocation7]   ;;  %vm845_vm10 = vcmask 392192   ;;  %vm847_vm11 = vcmask 517120  }
  0x2c   :  { %153 = vmax.xlane.f32.xlu0 %v152_v3  ;;  %890 = vmatprep.subr.bf16.mxu0 %v889_v10  ;;  %s855_s19 = sshll.u32 %s1064_s18, 4  ;;  %s856_s19 = int_to_ptr.vmem [resolvable:$true] %s855_s19 }
  0x2d   :  { %s1029_s20 = scalar_lea.vmem %s856_s19, 32  ;;  %p1034_p3 = scmp.lt.s32.totalorder %s856_s19, %s856_s19 }
  0x2e   :  { %p1030_p2 = scmp.ne.s32.totalorder %s856_s19, %s1029_s20  ;;  %p1035_p4 = scmp.lt.s32.totalorder %s1029_s20, %s1029_s20 }
  0x2f   :  { %892 = vmatpush3.bf16.msra.mxu0 %v889_v10 }
  0x30   :  { %p1036_p5 = por %p1035_p4, %p1034_p3 }
  0x32   :  { %883 = vmatmul.mubr.msk.f32.vlgmr.msra.gmra.mrb[0].mxu0 %vm59_vm2, %v47_v11  ;;  %p1037_p6 = pnand %p1036_p5, %p1030_p2 }
  0xb9   :  { %v154_v12 = vpop.xlane.xlu0 %153 }
  0xba   :  { %v155_v13 = vsub.f32 %v1124_v2, %v154_v12 }
  0xbc   :  { %v156_v14 = vmul.f32 1.442695, %v155_v13 }
  0xbe   :  { %901 = vpow2.f32 %v156_v14 }
  0xc8   :  { %v902_v15 = vpop.eup %901 }
  0xc9   :  { %v158_v16 = vsel %vm151_vm1, %v902_v15, 0.0 }
  0xca   :  { %159 = vadd.xlane.f32.xlu0 %v158_v16 }
 0x105   :  { %v884_v21 = vpop.f32.mrb[0].mxu0 }
 0x106   :  { %v132_v22 = vpop.f32.mrb[1].mxu0  ;;  %v138_v34 = vadd.f32 %v884_v21, %v865_v31 }
 0x107   :  { %v133_v32 = vadd.f32 %v865_v31, %v132_v22 }
 0x108   :  { %v144_v36 = vmul.f32 0.01, %v138_v34  ;;  %vm142_vm7 = vcmp.ge.f32.partialorder %v138_v34, 0.0 }
 0x109   :  { %v143_v33 = vmul.f32 0.01, %v133_v32  ;;  %vm141_vm3 = vcmp.ge.f32.partialorder %v133_v32, 0.0 }
 0x10a   :  { %v1155_v42 = vsel %vm142_vm7, %v138_v34, %v144_v36 }
 0x10b   :  { %v1144_v35 = vsel %vm141_vm3, %v133_v32, %v143_v33 }
 0x157   :  { %v160_v23 = vpop.xlane.xlu0 %159 }
 0x158   :  { %903 = vrcp.f32 %v160_v23 }
 0x162   :  { %v904_v24 = vpop.eup %903 }
 0x163   :  { %v162_v25 = vmul.f32 %v904_v24, %v902_v15 }
 0x165   :  { %v163_v27 = vmul.f32 %v162_v25, %v1117_v0 }
 0x167   :  { %v167_v28 = vrot.slane %v163_v27, %v1134_v26  ;;  %v174_v30 = vrot.slane %v163_v27, %v1138_v29 }
 0x169   :  { %169 = vbcast.lane.b32.xlu1 %v167_v28, 256 }
 0x16d   :  { %176 = vbcast.lane.b32.xlu1 %v174_v30, 256 }
 0x1db   :  { %v170_v37 = vpop.permute.xlu1 %169 }
 0x1dc   :  { %v1147_v38 = vmul.f32 %v170_v37, %v1144_v35 }
 0x1de   :  { %v333_v39 = vsel %vm332_vm4, %v1147_v38, 0.0  ;;  %v498_v40 = vsel %vm497_vm5, %v1147_v38, 0.0  ;;  %v663_v41 = vsel %vm662_vm6, %v1147_v38, 0.0 }
 0x1df   :  { %v334_v43 = vrot.slane %v333_v39, 4  ;;  %v499_v44 = vrot.slane %v498_v40, 4  ;;  %v177_v45 = vpop.permute.xlu1 %176  ;;  %v664_v49 = vrot.slane %v663_v41, 4 }
 0x1e0   :  { %v1158_v46 = vmul.f32 %v177_v45, %v1155_v42 }
 0x1e1   :  { %v335_v47 = vadd.f32 %v334_v43, %v333_v39  ;;  %v500_v48 = vadd.f32 %v499_v44, %v498_v40  ;;  %v665_v58 = vadd.f32 %v664_v49, %v663_v41  ;;  %v181_v40 = vsel %vm180_vm8, %v1147_v38, 0.0 }
 0x1e2   :  { %v340_v50 = vsel %vm332_vm4, %v1158_v46, 0.0  ;;  %v505_v51 = vsel %vm497_vm5, %v1158_v46, 0.0  ;;  %v670_v54 = vsel %vm662_vm6, %v1158_v46, 0.0  ;;  %v182_v41 = vrot.slane %v181_v40, 4 }
 0x1e3   :  { %v336_v52 = vrot.slane %v335_v47, 2  ;;  %v501_v53 = vrot.slane %v500_v48, 2  ;;  %v341_v55 = vrot.slane %v340_v50, 4  ;;  %v506_v56 = vrot.slane %v505_v51, 4 }
 0x1e4   :  { %v671_v62 = vrot.slane %v670_v54, 4  ;;  %v666_v6 = vrot.slane %v665_v58, 2  ;;  %v188_v43 = vsel %vm180_vm8, %v1158_v46, 0.0  ;;  %v183_v44 = vadd.f32 %v182_v41, %v181_v40 }
 0x1e5   :  { %v337_v57 = vadd.f32 %v336_v52, %v335_v47  ;;  %v502_v59 = vadd.f32 %v501_v53, %v500_v48  ;;  %v342_v60 = vadd.f32 %v341_v55, %v340_v50  ;;  %v507_v61 = vadd.f32 %v506_v56, %v505_v51 }
 0x1e6   :  { %v672_v10 = vadd.f32 %v671_v62, %v670_v54  ;;  %v667_v12 = vadd.f32 %v666_v6, %v665_v58  ;;  %v189_v45 = vrot.slane %v188_v43, 4  ;;  %v184_v47 = vrot.slane %v183_v44, 2 }
 0x1e7   :  { %v338_v63 = vrot.slane %v337_v57, 1  ;;  %v343_v3 = vrot.slane %v342_v60, 2  ;;  %v508_v4 = vrot.slane %v507_v61, 2  ;;  %v503_v7 = vrot.slane %v502_v59, 1 }
 0x1e8   :  { %v673_v16 = vrot.slane %v672_v10, 2  ;;  %v668_v17 = vrot.slane %v667_v12, 1  ;;  %v190_v48 = vadd.f32 %v189_v45, %v188_v43  ;;  %v185_v49 = vadd.f32 %v184_v47, %v183_v44 }
 0x1e9   :  { %v339_v5 = vadd.f32 %v338_v63, %v337_v57  ;;  %v344_v8 = vadd.f32 %v343_v3, %v342_v60  ;;  %v509_v9 = vadd.f32 %v508_v4, %v507_v61  ;;  %v504_v13 = vadd.f32 %v503_v7, %v502_v59 }
 0x1ea   :  { %v674_v19 = vadd.f32 %v673_v16, %v672_v10  ;;  %v669_v22 = vadd.f32 %v668_v17, %v667_v12  ;;  %v191_v50 = vrot.slane %v190_v48, 2  ;;  %v186_v51 = vrot.slane %v185_v49, 1 }
 0x1eb   :  { %905 = vtanh.f32 %v339_v5  ;;  %v345_v11 = vrot.slane %v344_v8, 1  ;;  %v510_v15 = vrot.slane %v509_v9, 1 }
 0x1ec   :  { %v675_v23 = vrot.slane %v674_v19, 1  ;;  %v192_v52 = vadd.f32 %v191_v50, %v190_v48  ;;  %v187_v54 = vadd.f32 %v186_v51, %v185_v49 }
 0x1ed   :  { %v346_v14 = vadd.f32 %v345_v11, %v344_v8  ;;  %v511_v18 = vadd.f32 %v510_v15, %v509_v9 }
 0x1ee   :  { %v676_v27 = vadd.f32 %v675_v23, %v674_v19  ;;  %v193_v55 = vrot.slane %v192_v52, 1 }
 0x1ef   :  { %907 = vtanh.f32 %v346_v14 }
 0x1f0   :  { %909 = vtanh.f32 %v504_v13  ;;  %v194_v57 = vadd.f32 %v193_v55, %v192_v52 }
 0x1f1   :  { %911 = vtanh.f32 %v511_v18 }
 0x1f2   :  { %913 = vtanh.f32 %v669_v22 }
 0x1f3   :  { %915 = vtanh.f32 %v676_v27 }
 0x1f4   :  { %917 = vtanh.f32 %v187_v54 }
 0x1f5   :  { %v906_v21 = vpop.eup %905  ;;  %919 = vtanh.f32 %v194_v57 }
 0x1f6   :  { %v349_v24 = vmul.f32 %v906_v21, %v1144_v35 }
 0x1f8   :  { %353 = vrot.lane.b32.xlu0 %v349_v24, %s1061_s3 }
 0x1f9   :  { %v908_v25 = vpop.eup %907 }
 0x1fa   :  { %v350_v28 = vmul.f32 %v908_v25, %v1155_v42  ;;  %v910_v30 = vpop.eup %909 }
 0x1fb   :  { %v514_v31 = vmul.f32 %v910_v30, %v1144_v35  ;;  %v912_v32 = vpop.eup %911 }
 0x1fc   :  { %355 = vrot.lane.b32.xlu1 %v350_v28, %s1061_s3  ;;  %v515_v33 = vmul.f32 %v912_v32, %v1155_v42  ;;  %v914_v34 = vpop.eup %913 }
 0x1fd   :  { %v679_v36 = vmul.f32 %v914_v34, %v1144_v35  ;;  %v916_v37 = vpop.eup %915 }
 0x1fe   :  { %v680_v39 = vmul.f32 %v916_v37, %v1155_v42  ;;  %v918_v62 = vpop.eup %917 }
 0x1ff   :  { %v197_v4 = vmul.f32 %v918_v62, %v1144_v35  ;;  %v920_v5 = vpop.eup %919 }
 0x200   :  { %518 = vrot.lane.b32.xlu1 %v514_v31, %s1062_s16  ;;  %v198_v9 = vmul.f32 %v920_v5, %v1155_v42 }
 0x201   :  { %v199_v8 = vsel %vm180_vm8, %v197_v4, 0.0 }
 0x202   :  { %v202_v10 = vsel %vm180_vm8, %v198_v9, 0.0 }
 0x204   :  { %520 = vrot.lane.b32.xlu1 %v515_v33, %s1062_s16 }
 0x208   :  { %683 = vrot.lane.b32.xlu1 %v679_v36, %s1063_s17 }
 0x20c   :  { %685 = vrot.lane.b32.xlu1 %v680_v39, %s1063_s17 }
 0x26a   :  { %v354_v53 = vpop.permute.xlu0 %353 }
 0x26b   :  { %v359_v56 = vsel %vm180_vm8, %v354_v53, 0.0 }
 0x26c   :  { %360 = vadd.xlane.f32.xlu1 %v359_v56 }
 0x26e   :  { %v356_v38 = vpop.permute.xlu1 %355 }
 0x26f   :  { %v362_v58 = vsel %vm180_vm8, %v356_v38, 0.0 }
 0x270   :  { %363 = vadd.xlane.f32.xlu0 %v362_v58 }
 0x272   :  { %v519_v46 = vpop.permute.xlu1 %518 }
 0x273   :  { %v524_v59 = vsel %vm180_vm8, %v519_v46, 0.0 }
 0x274   :  { %525 = vadd.xlane.f32.xlu0 %v524_v59 }
 0x276   :  { %v521_v60 = vpop.permute.xlu1 %520 }
 0x277   :  { %v527_v61 = vsel %vm180_vm8, %v521_v60, 0.0 }
 0x278   :  { %528 = vadd.xlane.f32.xlu1 %v527_v61 }
 0x27a   :  { %v684_v63 = vpop.permute.xlu1 %683 }
 0x27b   :  { %v689_v3 = vsel %vm180_vm8, %v684_v63, 0.0 }
 0x27c   :  { %690 = vadd.xlane.f32.xlu0 %v689_v3 }
 0x27e   :  { %v686_v6 = vpop.permute.xlu1 %685 }
 0x27f   :  { %v692_v7 = vsel %vm180_vm8, %v686_v6, 0.0 }
 0x280   :  { %693 = vadd.xlane.f32.xlu1 %v692_v7  ;;  %200 = vadd.xlane.f32.xlu0 %v199_v8 }
 0x284   :  { %203 = vadd.xlane.f32.xlu1 %v202_v10 }
 0x2f9   :  { %v361_v11 = vpop.xlane.xlu1 %360 }
 0x2fa   :  { %v370_v13 = vrot.slane %v361_v11, %v1132_v20 }
 0x2fd   :  { %v364_v12 = vpop.xlane.xlu0 %363 }
 0x2fe   :  { %v374_v14 = vrot.slane %v364_v12, %v1132_v20 }
 0x300   :  { %v375_v15 = vsel %vm217_vm9, %v374_v14, %v370_v13 }
 0x301   :  { %v377_v16 = vadd.f32 %v375_v15, %v1124_v2  ;;  %v526_v17 = vpop.xlane.xlu0 %525 }
 0x302   :  { %v535_v22 = vrot.slane %v526_v17, %v1132_v20 }
 0x303   :  { %v1197_v18 = vmul.f32 %v377_v16, %v1121_v1 }
 0x305   :  { %v529_v19 = vpop.xlane.xlu1 %528  ;;  %v379_v21 = vsel %vm151_vm1, %v1197_v18, -inf }
 0x306   :  { %v539_v23 = vrot.slane %v529_v19, %v1132_v20  ;;  %380 = vmax.xlane.f32.xlu0 %v379_v21 }
 0x308   :  { %v540_v24 = vsel %vm217_vm9, %v539_v23, %v535_v22 }
 0x309   :  { %v542_v25 = vadd.f32 %v540_v24, %v1124_v2  ;;  %v691_v27 = vpop.xlane.xlu0 %690 }
 0x30a   :  { %v700_v32 = vrot.slane %v691_v27, %v1132_v20 }
 0x30b   :  { %v1206_v28 = vmul.f32 %v542_v25, %v1121_v1 }
 0x30d   :  { %v694_v30 = vpop.xlane.xlu1 %693  ;;  %v544_v31 = vsel %vm151_vm1, %v1206_v28, -inf  ;;  %v201_v34 = vpop.xlane.xlu0 %200 }
 0x30e   :  { %v704_v33 = vrot.slane %v694_v30, %v1132_v20  ;;  %545 = vmax.xlane.f32.xlu1 %v544_v31  ;;  %v212_v40 = vrot.slane %v201_v34, %v1132_v20 }
 0x310   :  { %v705_v36 = vsel %vm217_vm9, %v704_v33, %v700_v32 }
 0x311   :  { %v707_v37 = vadd.f32 %v705_v36, %v1124_v2  ;;  %v204_v39 = vpop.xlane.xlu1 %203 }
 0x312   :  { %v216_v41 = vrot.slane %v204_v39, %v1132_v20 }
 0x313   :  { %v1217_v43 = vmul.f32 %v707_v37, %v1121_v1 }
 0x314   :  { %v218_v44 = vsel %vm217_vm9, %v216_v41, %v212_v40 }
 0x315   :  { %v220_v45 = vadd.f32 %v218_v44, %v1124_v2  ;;  %v709_v47 = vsel %vm151_vm1, %v1217_v43, -inf }
 0x316   :  { %710 = vmax.xlane.f32.xlu0 %v709_v47 }
 0x317   :  { %v1224_v48 = vmul.f32 %v220_v45, %v1121_v1 }
 0x319   :  { %v222_v49 = vsel %vm151_vm1, %v1224_v48, -inf }
 0x31a   :  { %223 = vmax.xlane.f32.xlu1 %v222_v49 }
 0x393   :  { %v381_v50 = vpop.xlane.xlu0 %380 }
 0x394   :  { %v382_v51 = vsub.f32 %v1197_v18, %v381_v50 }
 0x396   :  { %v383_v52 = vmul.f32 1.442695, %v382_v51 }
 0x398   :  { %921 = vpow2.f32 %v383_v52 }
 0x39b   :  { %v546_v53 = vpop.xlane.xlu1 %545 }
 0x39c   :  { %v547_v54 = vsub.f32 %v1206_v28, %v546_v53 }
 0x39e   :  { %v548_v2 = vmul.f32 1.442695, %v547_v54 }
 0x3a0   :  { %923 = vpow2.f32 %v548_v2 }
 0x3a2   :  { %v922_v55 = vpop.eup %921 }
 0x3a3   :  { %v711_v56 = vpop.xlane.xlu0 %710  ;;  %v385_v57 = vsel %vm151_vm1, %v922_v55, 0.0 }
 0x3a4   :  { %v712_v38 = vsub.f32 %v1217_v43, %v711_v56  ;;  %386 = vadd.xlane.f32.xlu0 %v385_v57 }
 0x3a6   :  { %v713_v58 = vmul.f32 1.442695, %v712_v38 }
 0x3a7   :  { %v224_v46 = vpop.xlane.xlu1 %223 }
 0x3a8   :  { %925 = vpow2.f32 %v713_v58  ;;  %v225_v59 = vsub.f32 %v1224_v48, %v224_v46 }
 0x3aa   :  { %v924_v60 = vpop.eup %923  ;;  %v226_v61 = vmul.f32 1.442695, %v225_v59 }
 0x3ab   :  { %v550_v62 = vsel %vm151_vm1, %v924_v60, 0.0 }
 0x3ac   :  { %927 = vpow2.f32 %v226_v61  ;;  %551 = vadd.xlane.f32.xlu1 %v550_v62 }
 0x3b2   :  { %v926_v63 = vpop.eup %925 }
 0x3b3   :  { %v715_v3 = vsel %vm151_vm1, %v926_v63, 0.0 }
 0x3b4   :  { %716 = vadd.xlane.f32.xlu0 %v715_v3 }
 0x3b6   :  { %v928_v4 = vpop.eup %927 }
 0x3b7   :  { %v228_v5 = vsel %vm151_vm1, %v928_v4, 0.0 }
 0x3b8   :  { %229 = vadd.xlane.f32.xlu1 %v228_v5 }
 0x431   :  { %v387_v6 = vpop.xlane.xlu0 %386 }
 0x432   :  { %929 = vrcp.f32 %v387_v6 }
 0x439   :  { %v552_v7 = vpop.xlane.xlu1 %551 }
 0x43a   :  { %931 = vrcp.f32 %v552_v7 }
 0x43c   :  { %v930_v8 = vpop.eup %929 }
 0x43d   :  { %v389_v9 = vmul.f32 %v930_v8, %v922_v55 }
 0x43f   :  { %v390_v10 = vmul.f32 %v389_v9, %v1117_v0 }
 0x441   :  { %v717_v11 = vpop.xlane.xlu0 %716  ;;  %v401_v12 = vrot.slane %v390_v10, %v1138_v29  ;;  %v394_v13 = vrot.slane %v390_v10, %v1134_v26 }
 0x442   :  { %933 = vrcp.f32 %v717_v11 }
 0x443   :  { %403 = vbcast.lane.b32.xlu1 %v401_v12, 256  ;;  %396 = vbcast.lane.b32.xlu0 %v394_v13, 256 }
 0x444   :  { %v932_v14 = vpop.eup %931 }
 0x445   :  { %v230_v15 = vpop.xlane.xlu1 %229  ;;  %v554_v16 = vmul.f32 %v932_v14, %v924_v60 }
 0x446   :  { %935 = vrcp.f32 %v230_v15 }
 0x447   :  { %v555_v17 = vmul.f32 %v554_v16, %v1117_v0 }
 0x449   :  { %v559_v19 = vrot.slane %v555_v17, %v1134_v26  ;;  %v566_v21 = vrot.slane %v555_v17, %v1138_v29 }
 0x44b   :  { %561 = vbcast.lane.b32.xlu1 %v559_v19, 256  ;;  %568 = vbcast.lane.b32.xlu0 %v566_v21, 256 }
 0x44c   :  { %v934_v22 = vpop.eup %933 }
 0x44d   :  { %v719_v23 = vmul.f32 %v934_v22, %v926_v63 }
 0x44f   :  { %v720_v24 = vmul.f32 %v719_v23, %v1117_v0 }
 0x450   :  { %v936_v25 = vpop.eup %935 }
 0x451   :  { %v731_v27 = vrot.slane %v720_v24, %v1138_v29  ;;  %v724_v30 = vrot.slane %v720_v24, %v1134_v26  ;;  %v232_v31 = vmul.f32 %v936_v25, %v928_v4 }
 0x453   :  { %733 = vbcast.lane.b32.xlu0 %v731_v27, 256  ;;  %726 = vbcast.lane.b32.xlu1 %v724_v30, 256  ;;  %v233_v32 = vmul.f32 %v232_v31, %v1117_v0 }
 0x455   :  { %v244_v33 = vrot.slane %v233_v32, %v1138_v29  ;;  %v237_v34 = vrot.slane %v233_v32, %v1134_v26 }
 0x457   :  { %246 = vbcast.lane.b32.xlu0 %v244_v33, 256  ;;  %239 = vbcast.lane.b32.xlu1 %v237_v34, 256 }
 0x4b5   :  { %v404_v36 = vpop.permute.xlu1 %403  ;;  %v397_v37 = vpop.permute.xlu0 %396 }
 0x4b6   :  { %v406_v39 = vmul.f32 %v404_v36, %v1155_v42  ;;  %v405_v40 = vmul.f32 %v397_v37, %v1144_v35 }
 0x4b8   :  { %v414_v41 = vsel %vm332_vm4, %v406_v39, 0.0  ;;  %v407_v44 = vsel %vm332_vm4, %v405_v40, 0.0 }
 0x4b9   :  { %v415_v45 = vrot.slane %v414_v41, 4  ;;  %v408_v47 = vrot.slane %v407_v44, 4 }
 0x4bb   :  { %v416_v49 = vadd.f32 %v415_v45, %v414_v41  ;;  %v409_v50 = vadd.f32 %v408_v47, %v407_v44 }
 0x4bd   :  { %v417_v51 = vrot.slane %v416_v49, 2  ;;  %v410_v52 = vrot.slane %v409_v50, 2  ;;  %v562_v53 = vpop.permute.xlu1 %561  ;;  %v569_v54 = vpop.permute.xlu0 %568 }
 0x4be   :  { %v570_v2 = vmul.f32 %v562_v53, %v1144_v35  ;;  %v571_v55 = vmul.f32 %v569_v54, %v1155_v42 }
 0x4bf   :  { %v418_v56 = vadd.f32 %v417_v51, %v416_v49  ;;  %v411_v57 = vadd.f32 %v410_v52, %v409_v50 }
 0x4c0   :  { %v572_v38 = vsel %vm497_vm5, %v570_v2, 0.0  ;;  %v579_v58 = vsel %vm497_vm5, %v571_v55, 0.0 }
 0x4c1   :  { %v419_v46 = vrot.slane %v418_v56, 1  ;;  %v412_v59 = vrot.slane %v411_v57, 1  ;;  %v573_v60 = vrot.slane %v572_v38, 4  ;;  %v580_v61 = vrot.slane %v579_v58, 4 }
 0x4c3   :  { %v420_v62 = vadd.f32 %v419_v46, %v418_v56  ;;  %v413_v63 = vadd.f32 %v412_v59, %v411_v57  ;;  %v574_v3 = vadd.f32 %v573_v60, %v572_v38  ;;  %v581_v4 = vadd.f32 %v580_v61, %v579_v58 }
 0x4c5   :  { %937 = vtanh.f32 %v420_v62  ;;  %v575_v5 = vrot.slane %v574_v3, 2  ;;  %v582_v6 = vrot.slane %v581_v4, 2  ;;  %v727_v7 = vpop.permute.xlu1 %726  ;;  %v734_v8 = vpop.permute.xlu0 %733 }
 0x4c6   :  { %939 = vtanh.f32 %v413_v63  ;;  %v735_v9 = vmul.f32 %v727_v7, %v1144_v35  ;;  %v736_v10 = vmul.f32 %v734_v8, %v1155_v42 }
 0x4c7   :  { %v576_v11 = vadd.f32 %v575_v5, %v574_v3  ;;  %v583_v12 = vadd.f32 %v582_v6, %v581_v4 }
 0x4c8   :  { %v737_v13 = vsel %vm662_vm6, %v735_v9, 0.0  ;;  %v744_v14 = vsel %vm662_vm6, %v736_v10, 0.0 }
 0x4c9   :  { %v577_v15 = vrot.slane %v576_v11, 1  ;;  %v584_v16 = vrot.slane %v583_v12, 1  ;;  %v738_v17 = vrot.slane %v737_v13, 4  ;;  %v745_v19 = vrot.slane %v744_v14, 4  ;;  %v247_v30 = vpop.permute.xlu0 %246  ;;  %v240_v44 = vpop.permute.xlu1 %239 }
 0x4ca   :  { %v249_v40 = vmul.f32 %v247_v30, %v1155_v42  ;;  %v248_v49 = vmul.f32 %v240_v44, %v1144_v35 }
 0x4cb   :  { %v578_v21 = vadd.f32 %v577_v15, %v576_v11  ;;  %v585_v22 = vadd.f32 %v584_v16, %v583_v12  ;;  %v739_v23 = vadd.f32 %v738_v17, %v737_v13  ;;  %v746_v24 = vadd.f32 %v745_v19, %v744_v14 }
 0x4cc   :  { %v257_v50 = vsel %vm180_vm8, %v249_v40, 0.0  ;;  %v250_v2 = vsel %vm180_vm8, %v248_v49, 0.0 }
 0x4cd   :  { %941 = vtanh.f32 %v578_v21  ;;  %v740_v25 = vrot.slane %v739_v23, 2  ;;  %v747_v27 = vrot.slane %v746_v24, 2  ;;  %v258_v53 = vrot.slane %v257_v50, 4 }
 0x4ce   :  { %943 = vtanh.f32 %v585_v22  ;;  %v251_v56 = vrot.slane %v250_v2, 4 }
 0x4cf   :  { %v938_v31 = vpop.eup %937  ;;  %v741_v32 = vadd.f32 %v740_v25, %v739_v23  ;;  %v748_v33 = vadd.f32 %v747_v27, %v746_v24  ;;  %v259_v57 = vadd.f32 %v258_v53, %v257_v50 }
 0x4d0   :  { %v940_v34 = vpop.eup %939  ;;  %v424_v36 = vmul.f32 %v938_v31, %v1155_v42  ;;  %v252_v46 = vadd.f32 %v251_v56, %v250_v2 }
 0x4d1   :  { %v742_v37 = vrot.slane %v741_v32, 1  ;;  %v749_v39 = vrot.slane %v748_v33, 1  ;;  %v423_v41 = vmul.f32 %v940_v34, %v1144_v35  ;;  %v260_v59 = vrot.slane %v259_v57, 2 }
 0x4d2   :  { %429 = vrot.lane.b32.xlu0 %v424_v36, %s1061_s3  ;;  %v253_v62 = vrot.slane %v252_v46, 2 }
 0x4d3   :  { %v743_v45 = vadd.f32 %v742_v37, %v741_v32  ;;  %v750_v47 = vadd.f32 %v749_v39, %v748_v33  ;;  %427 = vrot.lane.b32.xlu1 %v423_v41, %s1061_s3  ;;  %v261_v63 = vadd.f32 %v260_v59, %v259_v57 }
 0x4d4   :  { %v254_v3 = vadd.f32 %v253_v62, %v252_v46 }
 0x4d5   :  { %945 = vtanh.f32 %v743_v45  ;;  %v262_v4 = vrot.slane %v261_v63, 1 }
 0x4d6   :  { %947 = vtanh.f32 %v750_v47  ;;  %v255_v5 = vrot.slane %v254_v3, 1 }
 0x4d7   :  { %v942_v51 = vpop.eup %941  ;;  %v263_v6 = vadd.f32 %v262_v4, %v261_v63 }
 0x4d8   :  { %v944_v52 = vpop.eup %943  ;;  %v588_v54 = vmul.f32 %v942_v51, %v1144_v35  ;;  %v256_v7 = vadd.f32 %v255_v5, %v254_v3 }
 0x4d9   :  { %v589_v55 = vmul.f32 %v944_v52, %v1155_v42  ;;  %949 = vtanh.f32 %v263_v6 }
 0x4da   :  { %592 = vrot.lane.b32.xlu1 %v588_v54, %s1062_s16  ;;  %951 = vtanh.f32 %v256_v7 }
 0x4db   :  { %594 = vrot.lane.b32.xlu0 %v589_v55, %s1062_s16 }
 0x4df   :  { %v946_v38 = vpop.eup %945 }
 0x4e0   :  { %v948_v58 = vpop.eup %947  ;;  %v753_v60 = vmul.f32 %v946_v38, %v1144_v35 }
 0x4e1   :  { %v754_v61 = vmul.f32 %v948_v58, %v1155_v42 }
 0x4e2   :  { %757 = vrot.lane.b32.xlu1 %v753_v60, %s1063_s17 }
 0x4e3   :  { %759 = vrot.lane.b32.xlu0 %v754_v61, %s1063_s17  ;;  %v950_v8 = vpop.eup %949 }
 0x4e4   :  { %v267_v9 = vmul.f32 %v950_v8, %v1155_v42  ;;  %v952_v10 = vpop.eup %951 }
 0x4e5   :  { %v266_v12 = vmul.f32 %v952_v10, %v1144_v35 }
 0x4e6   :  { %v271_v11 = vsel %vm180_vm8, %v267_v9, 0.0 }
 0x4e7   :  { %v268_v13 = vsel %vm180_vm8, %v266_v12, 0.0 }
 0x502   :  { %272 = vadd.xlane.f32.xlu0 %v271_v11 }
 0x506   :  { %269 = vadd.xlane.f32.xlu1 %v268_v13 }
 0x544   :  { %v430_v14 = vpop.permute.xlu0 %429 }
 0x545   :  { %v428_v15 = vpop.permute.xlu1 %427  ;;  %v436_v16 = vsel %vm180_vm8, %v430_v14, 0.0 }
 0x546   :  { %v433_v17 = vsel %vm180_vm8, %v428_v15, 0.0  ;;  %437 = vadd.xlane.f32.xlu1 %v436_v16 }
 0x547   :  { %434 = vadd.xlane.f32.xlu0 %v433_v17 }
 0x54c   :  { %v593_v19 = vpop.permute.xlu1 %592 }
 0x54d   :  { %v595_v21 = vpop.permute.xlu0 %594  ;;  %v598_v22 = vsel %vm180_vm8, %v593_v19, 0.0 }
 0x54e   :  { %599 = vadd.xlane.f32.xlu0 %v598_v22  ;;  %v601_v23 = vsel %vm180_vm8, %v595_v21, 0.0 }
 0x54f   :  { %602 = vadd.xlane.f32.xlu1 %v601_v23 }
 0x554   :  { %v758_v24 = vpop.permute.xlu1 %757 }
 0x555   :  { %v760_v25 = vpop.permute.xlu0 %759  ;;  %v763_v27 = vsel %vm180_vm8, %v758_v24, 0.0 }
 0x556   :  { %764 = vadd.xlane.f32.xlu0 %v763_v27  ;;  %v766_v30 = vsel %vm180_vm8, %v760_v25, 0.0 }
 0x557   :  { %767 = vadd.xlane.f32.xlu1 %v766_v30 }
 0x58f   :  { %v273_v31 = vpop.xlane.xlu0 %272 }
 0x590   :  { %v283_v33 = vrot.slane %v273_v31, %v1132_v20 }
 0x593   :  { %v270_v32 = vpop.xlane.xlu1 %269 }
 0x594   :  { %v279_v34 = vrot.slane %v270_v32, %v1132_v20 }
 0x596   :  { %v284_v36 = vsel %vm217_vm9, %v283_v33, %v279_v34 }
 0x597   :  { %v286_v37 = vadd.f32 %v284_v36, %v1224_v48 }
 0x599   :  { %v287_v39 = vmul.f32 %v286_v37, %v1121_v1 }
 0x59b   :  { %v288_v40 = vsel %vm151_vm1, %v287_v39, -inf }
 0x59c   :  { %289 = vmax.xlane.f32.xlu0 %v288_v40 }
 0x5d3   :  { %v438_v41 = vpop.xlane.xlu1 %437 }
 0x5d4   :  { %v448_v44 = vrot.slane %v438_v41, %v1132_v20  ;;  %v435_v45 = vpop.xlane.xlu0 %434 }
 0x5d5   :  { %v444_v47 = vrot.slane %v435_v45, %v1132_v20 }
 0x5d7   :  { %v449_v49 = vsel %vm217_vm9, %v448_v44, %v444_v47 }
 0x5d8   :  { %v451_v50 = vadd.f32 %v449_v49, %v1197_v18 }
 0x5da   :  { %v452_v51 = vmul.f32 %v451_v50, %v1121_v1 }
 0x5db   :  { %v600_v52 = vpop.xlane.xlu0 %599 }
 0x5dc   :  { %v603_v53 = vpop.xlane.xlu1 %602  ;;  %v609_v48 = vrot.slane %v600_v52, %v1132_v20  ;;  %v453_v54 = vsel %vm151_vm1, %v452_v51, -inf }
 0x5dd   :  { %v613_v2 = vrot.slane %v603_v53, %v1132_v20  ;;  %454 = vmax.xlane.f32.xlu1 %v453_v54 }
 0x5df   :  { %v614_v55 = vsel %vm217_vm9, %v613_v2, %v609_v48 }
 0x5e0   :  { %v616_v56 = vadd.f32 %v614_v55, %v1206_v28 }
 0x5e2   :  { %v617_v57 = vmul.f32 %v616_v56, %v1121_v1 }
 0x5e3   :  { %v765_v38 = vpop.xlane.xlu0 %764 }
 0x5e4   :  { %v768_v58 = vpop.xlane.xlu1 %767  ;;  %v774_v18 = vrot.slane %v765_v38, %v1132_v20  ;;  %v618_v46 = vsel %vm151_vm1, %v617_v57, -inf }
 0x5e5   :  { %v778_v59 = vrot.slane %v768_v58, %v1132_v20  ;;  %619 = vmax.xlane.f32.xlu0 %v618_v46 }
 0x5e7   :  { %v779_v60 = vsel %vm217_vm9, %v778_v59, %v774_v18 }
 0x5e8   :  { %v781_v61 = vadd.f32 %v779_v60, %v1217_v43 }
 0x5ea   :  { %v782_v62 = vmul.f32 %v781_v61, %v1121_v1 }
 0x5ec   :  { %v783_v63 = vsel %vm151_vm1, %v782_v62, -inf }
 0x5ed   :  { %784 = vmax.xlane.f32.xlu1 %v783_v63 }
 0x629   :  { %v290_v28 = vpop.xlane.xlu0 %289 }
 0x62a   :  { %v291_v3 = vsub.f32 %v287_v39, %v290_v28 }
 0x62c   :  { %v292_v4 = vmul.f32 1.442695, %v291_v3 }
 0x62e   :  { %953 = vpow2.f32 %v292_v4 }
 0x638   :  { %v954_v5 = vpop.eup %953 }
 0x639   :  { %v294_v6 = vsel %vm151_vm1, %v954_v5, 0.0 }
 0x63a   :  { %295 = vadd.xlane.f32.xlu0 %v294_v6 }
 0x66a   :  { %v455_v7 = vpop.xlane.xlu1 %454 }
 0x66b   :  { %v456_v20 = vsub.f32 %v452_v51, %v455_v7 }
 0x66d   :  { %v457_v8 = vmul.f32 1.442695, %v456_v20 }
 0x66f   :  { %955 = vpow2.f32 %v457_v8 }
 0x672   :  { %v620_v9 = vpop.xlane.xlu0 %619 }
 0x673   :  { %v621_v10 = vsub.f32 %v617_v57, %v620_v9 }
 0x675   :  { %v622_v43 = vmul.f32 1.442695, %v621_v10 }
 0x677   :  { %957 = vpow2.f32 %v622_v43 }
 0x679   :  { %v956_v1 = vpop.eup %955 }
 0x67a   :  { %v785_v11 = vpop.xlane.xlu1 %784  ;;  %v459_v12 = vsel %vm151_vm1, %v956_v1, 0.0 }
 0x67b   :  { %v786_v13 = vsub.f32 %v782_v62, %v785_v11  ;;  %460 = vadd.xlane.f32.xlu1 %v459_v12 }
 0x67d   :  { %v787_v14 = vmul.f32 1.442695, %v786_v13 }
 0x67f   :  { %959 = vpow2.f32 %v787_v14 }
 0x681   :  { %v958_v15 = vpop.eup %957 }
 0x682   :  { %v624_v16 = vsel %vm151_vm1, %v958_v15, 0.0 }
 0x683   :  { %625 = vadd.xlane.f32.xlu0 %v624_v16 }
 0x689   :  { %v960_v17 = vpop.eup %959 }
 0x68a   :  { %v789_v19 = vsel %vm151_vm1, %v960_v17, 0.0 }
 0x68b   :  { %790 = vadd.xlane.f32.xlu1 %v789_v19 }
 0x6c7   :  { %v296_v21 = vpop.xlane.xlu0 %295 }
 0x6c8   :  { %961 = vrcp.f32 %v296_v21 }
 0x6d2   :  { %v962_v22 = vpop.eup %961 }
 0x6d3   :  { %v298_v23 = vmul.f32 %v962_v22, %v954_v5 }
 0x6d5   :  { %v299_v24 = vmul.f32 %v298_v23, %v1117_v0 }
 0x6d7   :  { %v310_v25 = vrot.slane %v299_v24, %v1138_v29  ;;  %v303_v27 = vrot.slane %v299_v24, %v1134_v26 }
 0x6d9   :  { %312 = vbcast.lane.b32.xlu1 %v310_v25, 256  ;;  %305 = vbcast.lane.b32.xlu0 %v303_v27, 256 }
 0x708   :  { %v461_v30 = vpop.xlane.xlu1 %460 }
 0x709   :  { %963 = vrcp.f32 %v461_v30 }
 0x710   :  { %v626_v31 = vpop.xlane.xlu0 %625 }
 0x711   :  { %965 = vrcp.f32 %v626_v31 }
 0x713   :  { %v964_v32 = vpop.eup %963 }
 0x714   :  { %v463_v33 = vmul.f32 %v964_v32, %v956_v1 }
 0x716   :  { %v464_v34 = vmul.f32 %v463_v33, %v1117_v0 }
 0x718   :  { %v791_v36 = vpop.xlane.xlu1 %790  ;;  %v468_v37 = vrot.slane %v464_v34, %v1134_v26  ;;  %v475_v39 = vrot.slane %v464_v34, %v1138_v29 }
 0x719   :  { %967 = vrcp.f32 %v791_v36 }
 0x71a   :  { %470 = vbcast.lane.b32.xlu1 %v468_v37, 256  ;;  %477 = vbcast.lane.b32.xlu0 %v475_v39, 256 }
 0x71b   :  { %v966_v40 = vpop.eup %965 }
 0x71c   :  { %v628_v41 = vmul.f32 %v966_v40, %v958_v15 }
 0x71e   :  { %v629_v44 = vmul.f32 %v628_v41, %v1117_v0 }
 0x720   :  { %v640_v45 = vrot.slane %v629_v44, %v1138_v29  ;;  %v633_v47 = vrot.slane %v629_v44, %v1134_v26 }
 0x722   :  { %642 = vbcast.lane.b32.xlu0 %v640_v45, 256  ;;  %635 = vbcast.lane.b32.xlu1 %v633_v47, 256 }
 0x723   :  { %v968_v49 = vpop.eup %967 }
 0x724   :  { %v793_v50 = vmul.f32 %v968_v49, %v960_v17 }
 0x726   :  { %v794_v51 = vmul.f32 %v793_v50, %v1117_v0 }
 0x728   :  { %v805_v52 = vrot.slane %v794_v51, %v1138_v29  ;;  %v798_v53 = vrot.slane %v794_v51, %v1134_v26 }
 0x72a   :  { %807 = vbcast.lane.b32.xlu0 %v805_v52, 256  ;;  %800 = vbcast.lane.b32.xlu1 %v798_v53, 256 }
 0x74b   :  { %v313_v48 = vpop.permute.xlu1 %312  ;;  %v306_v2 = vpop.permute.xlu0 %305 }
 0x74c   :  { %v315_v54 = vmul.f32 %v313_v48, %v1155_v42  ;;  %v314_v56 = vmul.f32 %v306_v2, %v1144_v35 }
 0x74e   :  { %v323_v55 = vsel %vm180_vm8, %v315_v54, 0.0  ;;  %v316_v29 = vsel %vm180_vm8, %v314_v56, 0.0 }
 0x74f   :  { %v324_v57 = vrot.slane %v323_v55, 4  ;;  %v317_v62 = vrot.slane %v316_v29, 4 }
 0x751   :  { %v325_v26 = vadd.f32 %v324_v57, %v323_v55  ;;  %v318_v6 = vadd.f32 %v317_v62, %v316_v29 }
 0x753   :  { %v326_v3 = vrot.slane %v325_v26, 2  ;;  %v319_v13 = vrot.slane %v318_v6, 2 }
 0x755   :  { %v327_v10 = vadd.f32 %v326_v3, %v325_v26  ;;  %v320_v25 = vadd.f32 %v319_v13, %v318_v6 }
 0x757   :  { %v328_v19 = vrot.slane %v327_v10, 1  ;;  %v321_v47 = vrot.slane %v320_v25, 1 }
 0x759   :  { %v329_v36 = vadd.f32 %v328_v19, %v327_v10  ;;  %v322_v54 = vadd.f32 %v321_v47, %v320_v25 }
 0x75b   :  { %969 = vtanh.f32 %v329_v36 }
 0x78c   :  { %v471_v38 = vpop.permute.xlu1 %470  ;;  %v478_v58 = vpop.permute.xlu0 %477 }
 0x78d   :  { %v479_v18 = vmul.f32 %v471_v38, %v1144_v35  ;;  %v480_v0 = vmul.f32 %v478_v58, %v1155_v42 }
 0x78f   :  { %v481_v46 = vsel %vm332_vm4, %v479_v18, 0.0  ;;  %v488_v59 = vsel %vm332_vm4, %v480_v0, 0.0  ;;  %v970_v18 = vpop.eup %969 }
 0x790   :  { %v482_v60 = vrot.slane %v481_v46, 4  ;;  %v489_v61 = vrot.slane %v488_v59, 4 }
 0x792   :  { %v483_v63 = vadd.f32 %v482_v60, %v481_v46  ;;  %v490_v28 = vadd.f32 %v489_v61, %v488_v59 }
 0x794   :  { %v636_v4 = vpop.permute.xlu1 %635  ;;  %v643_v5 = vpop.permute.xlu0 %642  ;;  %v484_v7 = vrot.slane %v483_v63, 2  ;;  %v491_v9 = vrot.slane %v490_v28, 2 }
 0x795   :  { %v644_v20 = vmul.f32 %v636_v4, %v1144_v35  ;;  %v645_v8 = vmul.f32 %v643_v5, %v1155_v42 }
 0x796   :  { %v485_v14 = vadd.f32 %v484_v7, %v483_v63  ;;  %v492_v15 = vadd.f32 %v491_v9, %v490_v28 }
 0x797   :  { %v646_v43 = vsel %vm497_vm5, %v644_v20, 0.0  ;;  %v653_v1 = vsel %vm497_vm5, %v645_v8, 0.0 }
 0x798   :  { %v647_v11 = vrot.slane %v646_v43, 4  ;;  %v654_v12 = vrot.slane %v653_v1, 4  ;;  %v486_v27 = vrot.slane %v485_v14, 1  ;;  %v493_v32 = vrot.slane %v492_v15, 1 }
 0x79a   :  { %v648_v16 = vadd.f32 %v647_v11, %v646_v43  ;;  %v655_v17 = vadd.f32 %v654_v12, %v653_v1  ;;  %v487_v49 = vadd.f32 %v486_v27, %v485_v14  ;;  %v494_v50 = vadd.f32 %v493_v32, %v492_v15 }
 0x79c   :  { %v649_v21 = vrot.slane %v648_v16, 2  ;;  %v656_v22 = vrot.slane %v655_v17, 2  ;;  %v801_v23 = vpop.permute.xlu1 %800  ;;  %v808_v24 = vpop.permute.xlu0 %807  ;;  %971 = vtanh.f32 %v487_v49 }
 0x79d   :  { %v809_v30 = vmul.f32 %v801_v23, %v1144_v35  ;;  %v810_v31 = vmul.f32 %v808_v24, %v1155_v42  ;;  %973 = vtanh.f32 %v494_v50 }
 0x79e   :  { %v650_v33 = vadd.f32 %v649_v21, %v648_v16  ;;  %v657_v34 = vadd.f32 %v656_v22, %v655_v17 }
 0x79f   :  { %v811_v37 = vsel %vm662_vm6, %v809_v30, 0.0  ;;  %v818_v39 = vsel %vm662_vm6, %v810_v31, 0.0 }
 0x7a0   :  { %v651_v40 = vrot.slane %v650_v33, 1  ;;  %v658_v41 = vrot.slane %v657_v34, 1  ;;  %v812_v44 = vrot.slane %v811_v37, 4  ;;  %v819_v45 = vrot.slane %v818_v39, 4 }
 0x7a2   :  { %v813_v51 = vadd.f32 %v812_v44, %v811_v37  ;;  %v820_v52 = vadd.f32 %v819_v45, %v818_v39  ;;  %v652_v35 = vadd.f32 %v651_v40, %v650_v33  ;;  %v659_v42 = vadd.f32 %v658_v41, %v657_v34 }
 0x7a4   :  { %v814_v53 = vrot.slane %v813_v51, 2  ;;  %v821_v48 = vrot.slane %v820_v52, 2  ;;  %975 = vtanh.f32 %v652_v35 }
 0x7a5   :  { %977 = vtanh.f32 %v659_v42 }
 0x7a6   :  { %v815_v2 = vadd.f32 %v814_v53, %v813_v51  ;;  %v822_v55 = vadd.f32 %v821_v48, %v820_v52  ;;  %979 = vtanh.f32 %v322_v54  ;;  %v972_v0 = vpop.eup %971 }
 0x7a7   :  { %v974_v29 = vpop.eup %973 }
 0x7a8   :  { %v816_v56 = vrot.slane %v815_v2, 1  ;;  %v823_v57 = vrot.slane %v822_v55, 1  ;;  %v833_v60 = vsel %vm217_vm9, %v974_v29, %v972_v0 }
 0x7aa   :  { %v817_v38 = vadd.f32 %v816_v56, %v815_v2  ;;  %v824_v58 = vadd.f32 %v823_v57, %v822_v55 }
 0x7ac   :  { %981 = vtanh.f32 %v817_v38 }
 0x7ad   :  { %983 = vtanh.f32 %v824_v58 }
 0x7ae   :  { %v976_v26 = vpop.eup %975 }
 0x7af   :  { %v978_v46 = vpop.eup %977 }
 0x7b0   :  { %v980_v59 = vpop.eup %979  ;;  %v837_v61 = vsel %vm217_vm9, %v978_v46, %v976_v26 }
 0x7b1   :  { %v829_v63 = vsel %vm217_vm9, %v970_v18, %v980_v59 }
 0x7b2   :  { %v843_v3 = vsel %vm180_vm8, %v829_v63, %v833_v60 }
 0x7b3   :  { %v844_v5 = vsel %vm59_vm2, %v843_v3, %v837_v61 }
 0x7b6   :  { %v982_v62 = vpop.eup %981 }
 0x7b7   :  { %v984_v28 = vpop.eup %983 }
 0x7b8   :  { %v841_v4 = vsel %vm217_vm9, %v984_v28, %v982_v62 }
 0x7b9   :  { %v846_v6 = vsel %vm845_vm10, %v844_v5, %v841_v4 }
 0x7ba   :  { %848 = vst.msk [vmem:[#allocation7] sm:$0x3] %vm847_vm11, %v846_v6 }
 0x7bb   :  { %1040 = shalt.err (!%p1037_p6)
}
 0x7bc   :  { %s1041_s23 = scalar_lea.hbm %s1364_s4, 32 }
 0x7bd   :  { %p1042_p7 = scmp.ne.s32.totalorder %s1364_s4, %s1041_s23  ;;  %p1045_p8 = scmp.lt.u32.totalorder %s1041_s23, %s1364_s4 }
 0x7bf   :  { %p1047_p9 = pnand %p1045_p8, %p1042_p7 }
 0x7c1   :  { %1050 = shalt.err (!%p1047_p9)
}
 0x7c2   :  { %858 = dma.vmem_to_hbm [thread:$0]  %s856_s19, 32, %s1364_s4, [#allocation4]  }
 0x7c3   :  { %1055 = dma.done.wait [#allocation4], 32  }
 0x7c4   :  { %1056 = vsyncadd [#allocation4], 4294967264 }
 0x7c5   :  { %862 = vsyncpa [#allocation3], 1 }
 0x7c6   :  { %863 = vsyncpa [#allocation6], 1 }
 0x7c7   :  { %864 = vsyncpa [#allocation4], 1 }

</bundles_post_ra>
